<compile_context>
chip_gen: v5e
topology: v5e:2x2
jax: 0.10.0
libtpu: 0.0.40
codegen_flags: <defaults>
</compile_context>

<pallas_src>
import functools

import jax
import jax.numpy as jnp
from jax.experimental import pallas as pl
from jax.experimental.pallas import tpu as pltpu

DIMENSION = 8        # number of series / features (DeepAnT "DIMENSION")
LOOKBACK = 10        # window length -> flatten size 16, as Linear(16, 40) requires
K = 3                # conv kernel size
C1 = 16              # conv1 out channels
C2 = 16              # conv2 out channels
H = 40               # dense hidden

T1 = LOOKBACK - (K - 1)      # 8   after conv1
T2 = T1 // 2                 # 4   after maxpool1
T3 = T2 - (K - 1)            # 2   after conv2
T4 = T3 // 2                 # 1   after maxpool2
assert C2 * T4 == 16, "flatten size must match Linear(16, 40)"
assert T1 * C1 == 128        # conv1 hidden fills a full 128-lane vreg


def deepant_kernel(x_ref, w1_ref, b1_ref, w2_ref, b2_ref,
                   wd1_ref, bd1_ref, wd2_ref, bd2_ref, out_ref, *, ew_dtype):
    # --- conv1d_1 (Cin=D -> 16, k=3): one bf16 block-Toeplitz matmul, f32 acc.
    #     w1t columns are permuted so even output times occupy lanes [0, 64)
    #     and odd output times lanes [64, 128).
    h1 = jnp.dot(x_ref[...], w1_ref[...], preferred_element_type=jnp.float32)
    h1 = jnp.maximum(h1 + b1_ref[...], 0.0).astype(ew_dtype)      # (TB, 128)

    # --- maxpool1d(k=2): single aligned half-tile max (even vs odd times);
    #     result lane order is [pool_t*C1 + c], exactly what w2t expects ---
    p1 = jnp.maximum(h1[:, :T2 * C1], h1[:, T2 * C1:])            # (TB, 64)

    # --- conv1d_2 (16 -> 16, k=3): one bf16 block-Toeplitz matmul, f32 acc ---
    h2 = jnp.dot(p1.astype(jnp.bfloat16), w2_ref[...],
                 preferred_element_type=jnp.float32)
    h2 = jnp.maximum(h2 + b2_ref[...], 0.0).astype(ew_dtype)      # (TB, 32)

    # --- maxpool1d(k=2); flatten is identity since T4 == 1 ---
    q = jnp.maximum(h2[:, :C2], h2[:, C2:2 * C2])                 # (TB, 16)

    # --- dense1 (16 -> 40), computed transposed: the only operand transpose
    #     is on the tiny (TB, 16) tensor and bias/ReLU run lane-dense over TB.
    d1_t = jax.lax.dot_general(
        wd1_ref[...], q.astype(jnp.bfloat16),                     # (H,16) x (TB,16)
        dimension_numbers=(((1,), (1,)), ((), ())),
        preferred_element_type=jnp.float32)                       # (H, TB)
    d1_t = jnp.maximum(d1_t + bd1_ref[...], 0.0)

    # TODO(synk): Dropout(p=0.25) is identity in eval mode; training-mode random masking not implemented.

    # --- dense2 (40 -> DIMENSION), emitted as (D, TB): batch on the 128-lane
    #     axis -> unmasked lane-dense stores ---
    out_t = jnp.dot(wd2_ref[...], d1_t.astype(jnp.bfloat16),      # (D,H) @ (H,TB)
                    preferred_element_type=jnp.float32)
    out_ref[...] = out_t + bd2_ref[...]                           # + (D, 1) bias


def _round_up(n, m):
    return ((n + m - 1) // m) * m


def _const_spec(arr):
    zeros = (0,) * arr.ndim
    return pl.BlockSpec(arr.shape, lambda b, _z=zeros: _z)


def _device_config():
    """Per-generation tuning: (elementwise dtype, max batch-tile rows)."""
    kind = ""
    try:
        kind = jax.devices()[0].device_kind.lower()
    except Exception:
        pass
    if any(v in kind for v in ("v2", "v3", "v4", "v5")):
        # v5e and older: no bf16 VPU (keep elementwise math in f32), single
        # vector-store slot -> slightly smaller tiles.
        return jnp.float32, 512
    # v6e / v7x (and newer): bf16 VPU, ample VMEM headroom -> 2048-row tiles.
    return jnp.bfloat16, 2048


def _choose_tiling(B, tb_max):
    """Pick (Bp, TB): TB a multiple of 128 (up to tb_max), batch padded UP to
    a multiple of TB (never falls back to tiny tiles), and >= 2 grid steps so
    the "parallel" axis can shard across v7x's two TensorCores."""
    bp128 = _round_up(max(B, 1), 128)
    if bp128 <= 2 * tb_max:
        TB = max(128, _round_up(pl.cdiv(bp128, 2), 128))
    else:
        TB = tb_max
    Bp = _round_up(bp128, TB)
    if Bp // TB < 2:
        Bp = 2 * TB
    return Bp, TB


def deepant_forward(x, params):
    """x: (B, LOOKBACK, DIMENSION) float32  ->  (B, DIMENSION) float32."""
    B = x.shape[0]
    w1, b1, w2, b2, wd1, bd1, wd2, bd2 = params
    ew_dtype, tb_max = _device_config()

    # ---- weight layout plumbing (plain JAX, outside the kernel) ----
    # conv1 block-Toeplitz: rows = t_in*D + d.  Output columns permuted so
    # even output times t=0,2,4,6 land in column slots 0..3 (lanes 0-63) and
    # odd times t=1,3,5,7 in slots 4..7 (lanes 64-127); maxpool1 then becomes
    # a single aligned half-tile max whose result is ordered [pool_t*C1 + c].
    def col_slot(t):
        return (t // 2) if t % 2 == 0 else (T2 + t // 2)

    w1t = jnp.zeros((LOOKBACK * DIMENSION, T1 * C1), jnp.float32)
    for t in range(T1):
        s = col_slot(t)
        for k in range(K):
            w1t = w1t.at[(t + k) * DIMENSION:(t + k + 1) * DIMENSION,
                         s * C1:(s + 1) * C1].set(w1[k])
    b1r = jnp.tile(b1, (1, T1))                 # (1, 128); bias is time-invariant

    # conv2 block-Toeplitz: rows = t_in*C1 + c_in, cols = t_out*C2 + c_out
    w2t = jnp.zeros((T2 * C1, T3 * C2), jnp.float32)
    for t in range(T3):
        for k in range(K):
            w2t = w2t.at[(t + k) * C1:(t + k + 1) * C1,
                         t * C2:(t + 1) * C2].set(w2[k])
    b2r = jnp.tile(b2, (1, T3))                 # (1, 32)

    wd1t = wd1.T                                # (H, 16)
    bd1c = bd1.reshape(H, 1)                    # (H, 1)
    wd2t = wd2.T                                # (D, H)
    bd2c = bd2.reshape(DIMENSION, 1)            # (D, 1)

    # bf16 matmul operands; f32 accumulation happens inside the kernel.
    w1t = w1t.astype(jnp.bfloat16)
    w2t = w2t.astype(jnp.bfloat16)
    wd1t = wd1t.astype(jnp.bfloat16)
    wd2t = wd2t.astype(jnp.bfloat16)

    # ---- input layout: flatten (T, D) onto lanes, bf16 in HBM, pad batch ----
    Bp, TB = _choose_tiling(B, tb_max)
    x2d = x.reshape(B, LOOKBACK * DIMENSION).astype(jnp.bfloat16)
    if Bp != B:
        x2d = jnp.pad(x2d, ((0, Bp - B), (0, 0)))

    kernel = functools.partial(deepant_kernel, ew_dtype=ew_dtype)

    out_t = pl.pallas_call(
        kernel,
        out_shape=jax.ShapeDtypeStruct((DIMENSION, Bp), jnp.float32),
        grid=(Bp // TB,),
        in_specs=[
            pl.BlockSpec((TB, LOOKBACK * DIMENSION), lambda b: (b, 0)),
            _const_spec(w1t), _const_spec(b1r),
            _const_spec(w2t), _const_spec(b2r),
            _const_spec(wd1t), _const_spec(bd1c),
            _const_spec(wd2t), _const_spec(bd2c),
        ],
        out_specs=pl.BlockSpec((DIMENSION, TB), lambda b: (0, b)),
        compiler_params=pltpu.CompilerParams(
            dimension_semantics=("parallel",)),
    )(x2d, w1t, b1r, w2t, b2r, wd1t, bd1c, wd2t, bd2c)

    return out_t[:, :B].T                       # (B, D)


def make_params(key):
    ks = jax.random.split(key, 8)
    scale = 0.1
    w1 = scale * jax.random.normal(ks[0], (K, DIMENSION, C1), jnp.float32)  # (k, Cin, Cout)
    b1 = scale * jax.random.normal(ks[1], (1, C1), jnp.float32)
    w2 = scale * jax.random.normal(ks[2], (K, C1, C2), jnp.float32)
    b2 = scale * jax.random.normal(ks[3], (1, C2), jnp.float32)
    wd1 = scale * jax.random.normal(ks[4], (C2 * T4, H), jnp.float32)       # (16, 40)
    bd1 = scale * jax.random.normal(ks[5], (1, H), jnp.float32)
    wd2 = scale * jax.random.normal(ks[6], (H, DIMENSION), jnp.float32)     # (40, D)
    bd2 = scale * jax.random.normal(ks[7], (1, DIMENSION), jnp.float32)
    return (w1, b1, w2, b2, wd1, bd1, wd2, bd2)


def deepant_reference(x, params):
    """Pure-JAX f32 reference mirroring the PyTorch forward (eval mode)."""
    w1, b1, w2, b2, wd1, bd1, wd2, bd2 = params
    h = sum(jnp.einsum('btd,do->bto', x[:, k:k + T1, :], w1[k]) for k in range(K)) + b1
    h = jnp.maximum(h, 0.0)
    h = h.reshape(h.shape[0], T2, 2, C1).max(axis=2)
    g = sum(jnp.einsum('btc,co->bto', h[:, k:k + T3, :], w2[k]) for k in range(K)) + b2
    g = jnp.maximum(g, 0.0)
    g = g.reshape(g.shape[0], T4, 2, C2).max(axis=2)
    flat = g.reshape(g.shape[0], -1)
    d1 = jnp.maximum(flat @ wd1 + bd1, 0.0)
    return d1 @ wd2 + bd2


if __name__ == "__main__":
    key = jax.random.PRNGKey(0)
    kx, kp = jax.random.split(key)
    B = 2
    x = jax.random.normal(kx, (B, LOOKBACK, DIMENSION), jnp.float32)
    params = make_params(kp)

    out = jax.block_until_ready(deepant_forward(x, params))

    # The kernel stores x in HBM as bf16 and uses bf16 matmul operands with
    # f32 accumulation (and bf16 intermediates on v6e/v7x); compare against an
    # f32 reference fed the same bf16-rounded inputs/weights with a
    # correspondingly loosened tolerance.
    def _round_bf16(a):
        return a.astype(jnp.bfloat16).astype(jnp.float32)

    w1, b1, w2, b2, wd1, bd1, wd2, bd2 = params
    params_r = (_round_bf16(w1), b1, _round_bf16(w2), b2,
                _round_bf16(wd1), bd1, _round_bf16(wd2), bd2)
    ref = jax.block_until_ready(deepant_reference(_round_bf16(x), params_r))

    assert out.shape == (B, DIMENSION)
    max_err = float(jnp.max(jnp.abs(out - ref)))
    assert jnp.allclose(out, ref, atol=3e-2, rtol=3e-2), max_err

    print("KERNEL_OK")
</pallas_src>

<mosaic_0001>
module attributes {stable_mosaic.version = 11 : i64} {
  func.func @deepant_kernel(%arg0: i32, %arg1: memref<128x80xbf16, #tpu.memory_space<vmem>>, %arg2: memref<80x128xbf16, #tpu.memory_space<vmem>>, %arg3: memref<1x128xf32, #tpu.memory_space<vmem>>, %arg4: memref<64x32xbf16, #tpu.memory_space<vmem>>, %arg5: memref<1x32xf32, #tpu.memory_space<vmem>>, %arg6: memref<40x16xbf16, #tpu.memory_space<vmem>>, %arg7: memref<40x1xf32, #tpu.memory_space<vmem>>, %arg8: memref<8x40xbf16, #tpu.memory_space<vmem>>, %arg9: memref<8x1xf32, #tpu.memory_space<vmem>>, %arg10: memref<8x128xf32, #tpu.memory_space<vmem>>) attributes {dimension_semantics = [#tpu.dimension_semantics<parallel>], iteration_bounds = array<i64: 2>, scalar_prefetch = 0 : i64, scratch_operands = 0 : i64, tpu.core_type = #tpu.core_type<tc>, window_params = [{transform_indices = @transform_0, window_bounds = array<i64: 128, 80>}, {pipeline_mode = #tpu.pipeline_mode<synchronous>, transform_indices = @transform_1, window_bounds = array<i64: 80, 128>}, {pipeline_mode = #tpu.pipeline_mode<synchronous>, transform_indices = @transform_2, window_bounds = array<i64: 1, 128>}, {pipeline_mode = #tpu.pipeline_mode<synchronous>, transform_indices = @transform_3, window_bounds = array<i64: 64, 32>}, {pipeline_mode = #tpu.pipeline_mode<synchronous>, transform_indices = @transform_4, window_bounds = array<i64: 1, 32>}, {pipeline_mode = #tpu.pipeline_mode<synchronous>, transform_indices = @transform_5, window_bounds = array<i64: 40, 16>}, {pipeline_mode = #tpu.pipeline_mode<synchronous>, transform_indices = @transform_6, window_bounds = array<i64: 40, 1>}, {pipeline_mode = #tpu.pipeline_mode<synchronous>, transform_indices = @transform_7, window_bounds = array<i64: 8, 40>}, {pipeline_mode = #tpu.pipeline_mode<synchronous>, transform_indices = @transform_8, window_bounds = array<i64: 8, 1>}, {transform_indices = @transform_9, window_bounds = array<i64: 8, 128>}]} {
    %c0 = arith.constant 0 : index
    %c0_0 = arith.constant 0 : index
    %0 = vector.load %arg1[%c0, %c0_0] : memref<128x80xbf16, #tpu.memory_space<vmem>>, vector<128x80xbf16>
    %c0_1 = arith.constant 0 : index
    %c0_2 = arith.constant 0 : index
    %1 = vector.load %arg2[%c0_1, %c0_2] : memref<80x128xbf16, #tpu.memory_space<vmem>>, vector<80x128xbf16>
    %cst = arith.constant dense<0.000000e+00> : vector<128x128xf32>
    %2 = tpu.matmul %0, %1, %cst {dimension_numbers = #tpu.dot_dimension_numbers<[1], [0], [0], [1], [0, 0, 1, 1], [], []>} : vector<128x80xbf16>, vector<80x128xbf16>, vector<128x128xf32> -> vector<128x128xf32>
    %c0_3 = arith.constant 0 : index
    %c0_4 = arith.constant 0 : index
    %3 = vector.load %arg3[%c0_3, %c0_4] : memref<1x128xf32, #tpu.memory_space<vmem>>, vector<1x128xf32>
    %4 = vector.broadcast %3 : vector<1x128xf32> to vector<128x128xf32>
    %5 = arith.addf %2, %4 : vector<128x128xf32>
    %cst_5 = arith.constant 0.000000e+00 : f32
    %6 = vector.broadcast %cst_5 : f32 to vector<128x128xf32>
    %7 = arith.maximumf %5, %6 : vector<128x128xf32>
    %8 = arith.truncf %7 : vector<128x128xf32> to vector<128x128xbf16>
    %9 = vector.extract_strided_slice %8 {offsets = [0, 0], sizes = [128, 64], strides = [1, 1]} : vector<128x128xbf16> to vector<128x64xbf16>
    %10 = vector.extract_strided_slice %8 {offsets = [0, 64], sizes = [128, 64], strides = [1, 1]} : vector<128x128xbf16> to vector<128x64xbf16>
    %11 = arith.maximumf %9, %10 : vector<128x64xbf16>
    %c0_6 = arith.constant 0 : index
    %c0_7 = arith.constant 0 : index
    %12 = vector.load %arg4[%c0_6, %c0_7] : memref<64x32xbf16, #tpu.memory_space<vmem>>, vector<64x32xbf16>
    %cst_8 = arith.constant dense<0.000000e+00> : vector<128x32xf32>
    %13 = tpu.matmul %11, %12, %cst_8 {dimension_numbers = #tpu.dot_dimension_numbers<[1], [0], [0], [1], [0, 0, 1, 1], [], []>} : vector<128x64xbf16>, vector<64x32xbf16>, vector<128x32xf32> -> vector<128x32xf32>
    %c0_9 = arith.constant 0 : index
    %c0_10 = arith.constant 0 : index
    %14 = vector.load %arg5[%c0_9, %c0_10] : memref<1x32xf32, #tpu.memory_space<vmem>>, vector<1x32xf32>
    %15 = vector.broadcast %14 : vector<1x32xf32> to vector<128x32xf32>
    %16 = arith.addf %13, %15 : vector<128x32xf32>
    %cst_11 = arith.constant 0.000000e+00 : f32
    %17 = vector.broadcast %cst_11 : f32 to vector<128x32xf32>
    %18 = arith.maximumf %16, %17 : vector<128x32xf32>
    %19 = arith.truncf %18 : vector<128x32xf32> to vector<128x32xbf16>
    %20 = vector.extract_strided_slice %19 {offsets = [0, 0], sizes = [128, 16], strides = [1, 1]} : vector<128x32xbf16> to vector<128x16xbf16>
    %21 = vector.extract_strided_slice %19 {offsets = [0, 16], sizes = [128, 16], strides = [1, 1]} : vector<128x32xbf16> to vector<128x16xbf16>
    %22 = arith.maximumf %20, %21 : vector<128x16xbf16>
    %c0_12 = arith.constant 0 : index
    %c0_13 = arith.constant 0 : index
    %23 = vector.load %arg6[%c0_12, %c0_13] : memref<40x16xbf16, #tpu.memory_space<vmem>>, vector<40x16xbf16>
    %cst_14 = arith.constant dense<0.000000e+00> : vector<40x128xf32>
    %24 = tpu.matmul %23, %22, %cst_14 {dimension_numbers = #tpu.dot_dimension_numbers<[1], [1], [0], [0], [0, 0, 1, 0], [], []>} : vector<40x16xbf16>, vector<128x16xbf16>, vector<40x128xf32> -> vector<40x128xf32>
    %c0_15 = arith.constant 0 : index
    %c0_16 = arith.constant 0 : index
    %25 = vector.load %arg7[%c0_15, %c0_16] : memref<40x1xf32, #tpu.memory_space<vmem>>, vector<40x1xf32>
    %26 = vector.broadcast %25 : vector<40x1xf32> to vector<40x128xf32>
    %27 = arith.addf %24, %26 : vector<40x128xf32>
    %cst_17 = arith.constant 0.000000e+00 : f32
    %28 = vector.broadcast %cst_17 : f32 to vector<40x128xf32>
    %29 = arith.maximumf %27, %28 : vector<40x128xf32>
    %c0_18 = arith.constant 0 : index
    %c0_19 = arith.constant 0 : index
    %30 = vector.load %arg8[%c0_18, %c0_19] : memref<8x40xbf16, #tpu.memory_space<vmem>>, vector<8x40xbf16>
    %31 = arith.truncf %29 : vector<40x128xf32> to vector<40x128xbf16>
    %cst_20 = arith.constant dense<0.000000e+00> : vector<8x128xf32>
    %32 = tpu.matmul %30, %31, %cst_20 {dimension_numbers = #tpu.dot_dimension_numbers<[1], [0], [0], [1], [0, 0, 1, 1], [], []>} : vector<8x40xbf16>, vector<40x128xbf16>, vector<8x128xf32> -> vector<8x128xf32>
    %c0_21 = arith.constant 0 : index
    %c0_22 = arith.constant 0 : index
    %33 = vector.load %arg9[%c0_21, %c0_22] : memref<8x1xf32, #tpu.memory_space<vmem>>, vector<8x1xf32>
    %34 = vector.broadcast %33 : vector<8x1xf32> to vector<8x128xf32>
    %35 = arith.addf %32, %34 : vector<8x128xf32>
    %c0_23 = arith.constant 0 : index
    %c0_24 = arith.constant 0 : index
    %36 = vector.load %arg10[%c0_23, %c0_24] : memref<8x128xf32, #tpu.memory_space<vmem>>, vector<8x128xf32>
    tpu.vector_store %arg10[%c0_23, %c0_24], %35 {strides = array<i32>} : memref<8x128xf32, #tpu.memory_space<vmem>>, vector<8x128xf32>,
    return
  }
  func.func @transform_0(%arg0: i32) -> (i32, i32) {
    %c0_i32 = arith.constant 0 : i32
    %c0_i32_0 = arith.constant 0 : i32
    return %arg0, %c0_i32 : i32, i32
  }
  func.func @transform_1(%arg0: i32) -> (i32, i32) {
    %c0_i32 = arith.constant 0 : i32
    %c0_i32_0 = arith.constant 0 : i32
    %c0_i32_1 = arith.constant 0 : i32
    return %c0_i32, %c0_i32_0 : i32, i32
  }
  func.func @transform_2(%arg0: i32) -> (i32, i32) {
    %c0_i32 = arith.constant 0 : i32
    %c0_i32_0 = arith.constant 0 : i32
    %c0_i32_1 = arith.constant 0 : i32
    return %c0_i32, %c0_i32_0 : i32, i32
  }
  func.func @transform_3(%arg0: i32) -> (i32, i32) {
    %c0_i32 = arith.constant 0 : i32
    %c0_i32_0 = arith.constant 0 : i32
    %c0_i32_1 = arith.constant 0 : i32
    return %c0_i32, %c0_i32_0 : i32, i32
  }
  func.func @transform_4(%arg0: i32) -> (i32, i32) {
    %c0_i32 = arith.constant 0 : i32
    %c0_i32_0 = arith.constant 0 : i32
    %c0_i32_1 = arith.constant 0 : i32
    return %c0_i32, %c0_i32_0 : i32, i32
  }
  func.func @transform_5(%arg0: i32) -> (i32, i32) {
    %c0_i32 = arith.constant 0 : i32
    %c0_i32_0 = arith.constant 0 : i32
    %c0_i32_1 = arith.constant 0 : i32
    return %c0_i32, %c0_i32_0 : i32, i32
  }
  func.func @transform_6(%arg0: i32) -> (i32, i32) {
    %c0_i32 = arith.constant 0 : i32
    %c0_i32_0 = arith.constant 0 : i32
    %c0_i32_1 = arith.constant 0 : i32
    return %c0_i32, %c0_i32_0 : i32, i32
  }
  func.func @transform_7(%arg0: i32) -> (i32, i32) {
    %c0_i32 = arith.constant 0 : i32
    %c0_i32_0 = arith.constant 0 : i32
    %c0_i32_1 = arith.constant 0 : i32
    return %c0_i32, %c0_i32_0 : i32, i32
  }
  func.func @transform_8(%arg0: i32) -> (i32, i32) {
    %c0_i32 = arith.constant 0 : i32
    %c0_i32_0 = arith.constant 0 : i32
    %c0_i32_1 = arith.constant 0 : i32
    return %c0_i32, %c0_i32_0 : i32, i32
  }
  func.func @transform_9(%arg0: i32) -> (i32, i32) {
    %c0_i32 = arith.constant 0 : i32
    %c0_i32_0 = arith.constant 0 : i32
    return %c0_i32, %arg0 : i32, i32
  }
}

</mosaic_0001>

<bundles_post_ra>
// kernel: tpu_custom_call.1
= control target key start
LH: loop header
LB: loop body
LE: loop exit
PB: predicated region body
PF: predicated region fallthrough
CT: control target
= control target key end

     0   :  { %14 = vsyncpa [#allocation3], 0  ;;  %s1855_s0 = inlined_call_operand.vmem [shape: bf16[256,80], index: 0, kind: input, shape index: {}]   ;;  %s1856_s1 = inlined_call_operand.vmem [shape: bf16[80,128], index: 1, kind: input, shape index: {}]   ;;  %s1857_s2 = inlined_call_operand.vmem [shape: f32[1,128], index: 2, kind: input, shape index: {}]   ;;  %s1858_s3 = inlined_call_operand.vmem [shape: bf16[64,32], index: 3, kind: input, shape index: {}]   ;;  %s1859_s4 = inlined_call_operand.vmem [shape: f32[1,32], index: 4, kind: input, shape index: {}]   ;;  %s1860_s5 = inlined_call_operand.vmem [shape: bf16[40,16], index: 5, kind: input, shape index: {}]   ;;  %s1861_s6 = inlined_call_operand.vmem [shape: f32[40,1], index: 6, kind: input, shape index: {}]   ;;  %s1862_s7 = inlined_call_operand.vmem [shape: bf16[8,40], index: 7, kind: input, shape index: {}]   ;;  %s1863_s8 = inlined_call_operand.vmem [shape: f32[8,1], index: 8, kind: input, shape index: {}]   ;;  %s1864_s9 = inlined_call_operand.hbm [shape: f32[8,256], index: 9, kind: output, shape index: {}]  }
   0x1   :  { %16 = vsyncpa [#allocation3 + $0x1], 0  ;;  %s1486_s30 = smov 0   ;;  %s1488_s10 = smov 0  }
   0x2   :  { %s1490_s11 = smov 0   ;;  %s1492_s12 = smov 0  }
   0x3 LB: > { %s1507_s13 = sadd.s32 4294967295, %s1431_s12   ;;  %s1107_s14 = sadd.s32 4294967294, %s1431_s12   ;;  %s1431_s12 = sphi %s1492_s12, %s1870_s12   ;;  %s1427_s11 = sphi %s1490_s11, %s1869_s11   ;;  %s1423_s10 = sphi %s1488_s10, %s1868_s10   ;;  %s1419_s30 = sphi %s1486_s30, %s1867_s30  }
   0x4   : > { %s1511_s15 = sadd.s32 1, %s1431_s12   ;;  %s223_s16 = sadd.s32 1, %s1427_s11 }
   0x5   : > { %s220_s17 = ssub.s32 %s1431_s12, %s1511_s15  ;;  %p233_p0 = scmp.ne.s32.totalorder %s1427_s11, %s1423_s10 }
   0x6   : > { %p221_p1 = scmp.eq.s32.totalorder %s220_s17, 0  ;;  %p234_p2 = scmp.eq.s32.totalorder %s1507_s13, 1 }
   0x7   : > { %p239_p3 = scmp.ne.s32.totalorder %s1423_s10, %s1419_s30  ;;  %p240_p4 = scmp.eq.s32.totalorder %s1107_s14, 1 }
   0x8   : > { %s1522_s18 = scalar_select %p221_p1, %s1427_s11, %s223_s16  }
   0x9   : > { %p1524_p5 = por %p234_p2, %p233_p0  ;;  %p1528_p6 = por %p240_p4, %p239_p3 }
   0xa   : > { %p1110_p7 = scmp.ge.s32.totalorder %s1431_s12, 1  ;;  %p291_p8 = scmp.lt.s32.totalorder %s1431_s12, 3 }
   0xc   : > { %p292_p9 = pnand %p1110_p7, %p291_p8 }
   0xd   : > { %s1112_s23 = sshll.u32 (!%p292_p9), %s1507_s13, 4  ;;  %s1433_s26 = smov (!%p292_p9), 64  }
   0xe   : > { %295 = sbr.rel (%p292_p9) target bundleno = 1011 (0x3f3), region = 56  ;;  %p328_p10 = scmp.lt.s32.totalorder (!%p292_p9), %s1112_s23, 31 }
   0xf   : > { %s1434_s25 = smov (!%p292_p9), 112   ;;  %s324_s22 = sand.u32 (!%p292_p9), 1, %s1423_s10  }
  0x10   : > { %s1033_s16 = scalar_lea.sflag (!%p292_p9), [#allocation3], %s324_s22 }
  0x13   : > { %v1226_v0 = vld [vmem:[%s1856_s1 + $0x20] sm:$0xff]  ;;  %v1225_v1 = vld [vmem:[%s1856_s1 + $0x18] sm:$0xff]  ;;  %v1224_v2 = vld [vmem:[%s1856_s1 + $0x10] sm:$0xff]  ;;  %s1872_s23 = smov (!%p328_p10, %s1112_s23), 31  ;;  %vm434_vm0 = vcmask 654336   ;;  %vm680_vm1 = vcmask 523264  }
  0x14   : > { %462 = vmatpush.bf16.msra.mxu0 %v1226_v0  ;;  %1233 = vmatpush.bf16.msra.mxu3 %v1226_v0  ;;  %v1223_v3 = vld [vmem:[%s1856_s1 + $0x8] sm:$0xff]  ;;  %s1113_s14 = sshll.u32 %s1872_s23, 2  ;;  %v1222_v4 = vld [vmem:[%s1856_s1] sm:$0xff]  ;;  %v1230_v57 = vld [vmem:[%s1858_s3 + $0x18] sm:$0xff]  ;;  %vm938_vm2 = vcmask 130048   ;;  %vm1014_vm3 = vcmask 1043456  }
  0x15   : > { %s331_s24 = scalar_lea.vmem %s1855_s0, %s1113_s14  ;;  %v1564_v13 = vld [vmem:[%s1857_s2] ss:$0 sm:$0xff]  ;;  %709 = vmatpush.bf16.msra.mxu1 %v1230_v57  ;;  %v1229_v58 = vld [vmem:[%s1858_s3 + $0x10] sm:$0xff]  ;;  %v1228_v63 = vld [vmem:[%s1858_s3 + $0x8] sm:$0xff]  ;;  %vm1010_vm4 = vcmask 326656   ;;  %s1111_s23 = sshll.u32 %s324_s22, 3 }
  0x16   : > { %v1214_v5 = vld [vmem:[%s331_s24] sm:$0xff]  ;;  %v1220_v6 = vld [vmem:[%s331_s24 + $0x30] sm:$0xff]  ;;  %v1215_v7 = vld [vmem:[%s331_s24 + $0x8] sm:$0xff]  ;;  %s326_s28 = scalar_lea.vmem [#allocation2], %s1111_s23 }
  0x17   : > { %v1221_v8 = vld [vmem:[%s331_s24 + $0x38] sm:$0xff]  ;;  %v1216_v9 = vld [vmem:[%s331_s24 + $0x10] sm:$0xff]  ;;  %v1218_v11 = vld [vmem:[%s331_s24 + $0x20] sm:$0xff]  ;;  %s1045_s29 = sshll.u32 %s326_s28, 4  ;;  %s1046_s29 = int_to_ptr.vmem [resolvable:$true] %s1045_s29 }
  0x18   : > { %463 = vmatpush.bf16.msra.mxu0 %v1225_v1  ;;  %1234 = vmatpush.bf16.msra.mxu3 %v1225_v1  ;;  %v1217_v10 = vld [vmem:[%s331_s24 + $0x18] sm:$0xff]  ;;  %v1219_v12 = vld [vmem:[%s331_s24 + $0x28] sm:$0xff]  ;;  %s1211_s24 = sshll.u32 %s1507_s13, 3 }
  0x19   : > { %710 = vmatpush.bf16.msra.mxu1 %v1229_v58  ;;  %s1043_s27 = scalar_lea.hbm %s1864_s9, %s1211_s24  ;;  %s1389_s24 = scalar_lea.hbm %s1864_s9, 16 }
  0x1a   : > { %s1047_s14 = sshll.u32 %s1043_s27, 4  ;;  %s1048_s14 = int_to_ptr.hbm [resolvable:$true] %s1047_s14 }
  0x1b   : > { %s1383_s17 = sshra.s32 %s1048_s14, 4  ;;  %s1384_s17 = int_to_ptr.hbm [resolvable:$true] %s1383_s17 }
  0x1c   : > { %464 = vmatpush.bf16.msra.mxu0 %v1224_v2  ;;  %1235 = vmatpush.bf16.msra.mxu3 %v1224_v2  ;;  %s1385_s21 = scalar_lea.hbm %s1384_s17, 8  ;;  %p1390_p0 = scmp.lt.s32.totalorder %s1384_s17, %s1864_s9 }
  0x1d   : > { %711 = vmatpush.bf16.msra.mxu1 %v1228_v63  ;;  %p1386_p11 = scmp.ne.s32.totalorder %s1384_s17, %s1385_s21  ;;  %p1391_p1 = scmp.lt.s32.totalorder %s1389_s24, %s1385_s21 }
  0x1f   : > { %p1387_p12 = pnand %p1386_p11, %p1524_p5  ;;  %p1392_p2 = por %p1391_p1, %p1390_p0 }
  0x20   : > { %465 = vmatpush.bf16.msra.mxu0 %v1223_v3  ;;  %1236 = vmatpush.bf16.msra.mxu3 %v1223_v3 }
  0x21   : > { %p1388_p13 = pneg %p1387_p12 }
  0x23   : > { %p1393_p3 = pnand %p1392_p2, %p1388_p13 }
  0x24   : > { %466 = vmatpush.bf16.msra.mxu0 %v1222_v4  ;;  %1237 = vmatpush.bf16.msra.mxu3 %v1222_v4 }
  0x27   : > { %1166 = vmatmul.msk.bf16.vlgmr.msra.gmra.mxu0 %vm434_vm0, %v1214_v5  ;;  %1172 = vmatmul.msk.bf16.vlgmr.msra.gmra.mxu3 %vm434_vm0, %v1220_v6 }
  0x28   : > { %1238 = vmatpush.bf16.msrb.mxu3 %v1230_v57 }
  0x2c   : > { %1239 = vmatpush.bf16.msrb.mxu3 %v1229_v58 }
  0x30   : > { %1240 = vmatpush.bf16.msrb.mxu3 %v1228_v63 }
  0x37   : > { %1167 = vmatmul.msk.bf16.gmra.mxu0 %vm434_vm0, %v1215_v7  ;;  %1173 = vmatmul.msk.bf16.gmra.mxu3 %vm434_vm0, %v1221_v8 }
  0x47   : > { %1168 = vmatmul.msk.bf16.gmra.mxu0 %vm434_vm0, %v1216_v9  ;;  %v1227_v9 = vld [vmem:[%s1858_s3] sm:$0xff] }
  0x48   : > { %712 = vmatpush.bf16.msra.mxu1 %v1227_v9  ;;  %1241 = vmatpush.bf16.msrb.mxu3 %v1227_v9 }
  0x57   : > { %1169 = vmatmul.msk.bf16.gmra.mxu0 %vm434_vm0, %v1217_v10 }
  0x67   : > { %1170 = vmatmul.msk.bf16.gmra.mxu0 %vm434_vm0, %v1218_v11 }
  0x77   : > { %1171 = vmatmul.msk.bf16.gmra.mxu0 %vm434_vm0, %v1219_v12 }
  0xa4   : > { %v468_v14 = vpop.f32.mrf.mxu0 }
  0xa5   : > { %v1567_v15 = vadd.f32 %v1564_v13, %v468_v14 }
  0xa7   : > { %v508_v16 = vmax.f32 %v1567_v15, 0.0 }
  0xaa   : > { %v498_v23 = vpop.f32.mrf.mxu3 }
  0xab   : > { %v1597_v33 = vadd.f32 %v1564_v13, %v498_v23 }
  0xac   : > { %v470_v17 = vpop.f32.mrf.mxu0 }
  0xad   : > { %v1571_v18 = vadd.f32 %v1564_v13, %v470_v17  ;;  %v520_v39 = vmax.f32 %v1597_v33, 0.0 }
  0xaf   : > { %v509_v19 = vmax.f32 %v1571_v18, 0.0 }
  0xb1   : > { %v1284_v21 = vpack.i.bf16 %v509_v19, %v508_v16 }
  0xb2   : > { %v500_v29 = vpop.f32.mrf.mxu3 }
  0xb3   : > { %1285 = vrot.lane.b32.xlu0 %v1284_v21, %s1433_s26  ;;  %v1600_v34 = vadd.f32 %v1564_v13, %v500_v29 }
  0xb4   : > { %v473_v20 = vpop.f32.mrf.mxu0 }
  0xb5   : > { %v1579_v22 = vadd.f32 %v1564_v13, %v473_v20  ;;  %v521_v40 = vmax.f32 %v1600_v34, 0.0 }
  0xb7   : > { %v510_v24 = vmax.f32 %v1579_v22, 0.0  ;;  %v1299_v47 = vpack.i.bf16 %v521_v40, %v520_v39 }
  0xba   : > { %v503_v37 = vpop.f32.mrf.mxu3 }
  0xbb   : > { %v1618_v46 = vadd.f32 %v1564_v13, %v503_v37 }
  0xbc   : > { %v475_v25 = vpop.f32.mrf.mxu0 }
  0xbd   : > { %v1584_v26 = vadd.f32 %v1564_v13, %v475_v25  ;;  %v522_v52 = vmax.f32 %v1618_v46, 0.0 }
  0xbf   : > { %v511_v27 = vmax.f32 %v1584_v26, 0.0 }
  0xc1   : > { %v1289_v30 = vpack.i.bf16 %v511_v27, %v510_v24 }
  0xc2   : > { %v505_v44 = vpop.f32.mrf.mxu3 }
  0xc3   : > { %1290 = vrot.lane.b32.xlu0 %v1289_v30, %s1433_s26  ;;  %v1625_v48 = vadd.f32 %v1564_v13, %v505_v44 }
  0xc4   : > { %v478_v28 = vpop.f32.mrf.mxu0 }
  0xc5   : > { %v1592_v31 = vadd.f32 %v1564_v13, %v478_v28  ;;  %v523_v53 = vmax.f32 %v1625_v48, 0.0 }
  0xc7   : > { %v512_v32 = vmax.f32 %v1592_v31, 0.0  ;;  %v1309_v60 = vpack.i.bf16 %v523_v53, %v522_v52 }
  0xcc   : > { %v480_v35 = vpop.f32.mrf.mxu0 }
  0xcd   : > { %v1603_v36 = vadd.f32 %v1564_v13, %v480_v35 }
  0xcf   : > { %v513_v38 = vmax.f32 %v1603_v36, 0.0 }
  0xd1   : > { %v1294_v42 = vpack.i.bf16 %v513_v38, %v512_v32 }
  0xd3   : > { %1295 = vrot.lane.b32.xlu1 %v1294_v42, %s1433_s26 }
  0xd4   : > { %v483_v41 = vpop.f32.mrf.mxu0 }
  0xd5   : > { %v1613_v43 = vadd.f32 %v1564_v13, %v483_v41 }
  0xd7   : > { %v514_v45 = vmax.f32 %v1613_v43, 0.0 }
  0xdb   : > { %1300 = vrot.lane.b32.xlu1 %v1299_v47, %s1433_s26 }
  0xdc   : > { %v485_v49 = vpop.f32.mrf.mxu0 }
  0xdd   : > { %v1628_v50 = vadd.f32 %v1564_v13, %v485_v49 }
  0xdf   : > { %v515_v51 = vmax.f32 %v1628_v50, 0.0 }
  0xe1   : > { %v1304_v55 = vpack.i.bf16 %v515_v51, %v514_v45 }
  0xe3   : > { %1305 = vrot.lane.b32.xlu2 %v1304_v55, %s1433_s26 }
  0xe4   : > { %v488_v54 = vpop.f32.mrf.mxu0 }
  0xe5   : > { %v1639_v56 = vadd.f32 %v1564_v13, %v488_v54 }
  0xe7   : > { %v516_v59 = vmax.f32 %v1639_v56, 0.0 }
  0xeb   : > { %1310 = vrot.lane.b32.xlu2 %v1309_v60, %s1433_s26 }
  0xec   : > { %v490_v61 = vpop.f32.mrf.mxu0 }
  0xed   : > { %v1654_v62 = vadd.f32 %v1564_v13, %v490_v61 }
  0xef   : > { %v517_v0 = vmax.f32 %v1654_v62, 0.0 }
  0xf1   : > { %v1314_v2 = vpack.i.bf16 %v517_v0, %v516_v59 }
  0xf3   : > { %1315 = vrot.lane.b32.xlu0 %v1314_v2, %s1433_s26 }
  0xf4   : > { %v493_v1 = vpop.f32.mrf.mxu0 }
  0xf5   : > { %v1666_v3 = vadd.f32 %v1564_v13, %v493_v1  ;;  %v1368_v1 = vld [vmem:[%s1859_s4] ss:$0 sm:$0xff] }
  0xf7   : > { %v518_v4 = vmax.f32 %v1666_v3, 0.0 }
  0xfc   : > { %v495_v5 = vpop.f32.mrf.mxu0 }
  0xfd   : > { %v496_v6 = vadd.f32 %v1564_v13, %v495_v5 }
  0xff   : > { %v519_v7 = vmax.f32 %v496_v6, 0.0 }
 0x101   : > { %v1319_v8 = vpack.i.bf16 %v519_v7, %v518_v4 }
 0x103   : > { %1320 = vrot.lane.b32.xlu1 %v1319_v8, %s1433_s26 }
 0x125   : > { %v1286_v10 = vpop.permute.xlu0 %1285 }
 0x126   : > { %v1288_v11 = vunpack.i.h.bf16 %v1286_v10  ;;  %v1287_v12 = vunpack.i.l.bf16 %v1286_v10 }
 0x128   : > { %v621_v14 = vmax.f32 %v509_v19, %v1288_v11  ;;  %v620_v13 = vmax.f32 %v508_v16, %v1287_v12 }
 0x12a   : > { %v636_v17 = vpack.c.bf16 %v621_v14, %v620_v13 }
 0x12c   : > { %1190 = vmatmul.msk.bf16.vlgmr.msra.gmra.mxu1 %vm680_vm1, %v636_v17 }
 0x135   : > { %v1291_v20 = vpop.permute.xlu0 %1290 }
 0x136   : > { %v1293_v21 = vunpack.i.h.bf16 %v1291_v20  ;;  %v1292_v23 = vunpack.i.l.bf16 %v1291_v20 }
 0x138   : > { %v623_v25 = vmax.f32 %v511_v27, %v1293_v21  ;;  %v622_v28 = vmax.f32 %v510_v24, %v1292_v23 }
 0x13a   : > { %v637_v29 = vpack.c.bf16 %v623_v25, %v622_v28 }
 0x13c   : > { %1191 = vmatmul.msk.bf16.gmra.mxu1 %vm680_vm1, %v637_v29 }
 0x13d   : > { %v1306_v26 = vpop.permute.xlu2 %1305 }
 0x13e   : > { %v1308_v42 = vunpack.i.h.bf16 %v1306_v26  ;;  %v1307_v44 = vunpack.i.l.bf16 %v1306_v26 }
 0x140   : > { %v627_v31 = vmax.f32 %v515_v51, %v1308_v42 }
 0x145   : > { %v1296_v18 = vpop.permute.xlu1 %1295 }
 0x146   : > { %v1298_v19 = vunpack.i.h.bf16 %v1296_v18  ;;  %v1297_v15 = vunpack.i.l.bf16 %v1296_v18 }
 0x148   : > { %v625_v16 = vmax.f32 %v513_v38, %v1298_v19  ;;  %v624_v30 = vmax.f32 %v512_v32, %v1297_v15  ;;  %v626_v32 = vmax.f32 %v514_v45, %v1307_v44  ;;  %v1311_v38 = vpop.permute.xlu2 %1310 }
 0x149   : > { %v1313_v47 = vunpack.i.h.bf16 %v1311_v38  ;;  %v1312_v49 = vunpack.i.l.bf16 %v1311_v38 }
 0x14a   : > { %v638_v35 = vpack.c.bf16 %v625_v16, %v624_v30  ;;  %v639_v54 = vpack.c.bf16 %v627_v31, %v626_v32 }
 0x14b   : > { %v635_v33 = vmax.f32 %v523_v53, %v1313_v47  ;;  %v634_v34 = vmax.f32 %v522_v52, %v1312_v49 }
 0x14c   : > { %1192 = vmatmul.msk.bf16.gmra.mxu1 %vm680_vm1, %v638_v35 }
 0x14d   : > { %v1301_v27 = vpop.permute.xlu1 %1300 }
 0x14e   : > { %v1303_v37 = vunpack.i.h.bf16 %v1301_v27  ;;  %v1302_v22 = vunpack.i.l.bf16 %v1301_v27 }
 0x150   : > { %v633_v24 = vmax.f32 %v521_v40, %v1303_v37  ;;  %v632_v41 = vmax.f32 %v520_v39, %v1302_v22  ;;  %v643_v39 = vpack.c.bf16 %v635_v33, %v634_v34 }
 0x152   : > { %v642_v36 = vpack.c.bf16 %v633_v24, %v632_v41 }
 0x154   : > { %1196 = vmatmul.msk.bf16.vlgmr.msrb.gmra.mxu3 %vm680_vm1, %v642_v36 }
 0x15c   : > { %1193 = vmatmul.msk.bf16.gmra.mxu1 %vm680_vm1, %v639_v54 }
 0x164   : > { %1197 = vmatmul.msk.bf16.gmra.mxu3 %vm680_vm1, %v643_v39 }
 0x165   : > { %v1316_v40 = vpop.permute.xlu0 %1315 }
 0x166   : > { %v1318_v50 = vunpack.i.h.bf16 %v1316_v40  ;;  %v1317_v51 = vunpack.i.l.bf16 %v1316_v40 }
 0x168   : > { %v629_v43 = vmax.f32 %v517_v0, %v1318_v50  ;;  %v628_v45 = vmax.f32 %v516_v59, %v1317_v51 }
 0x16a   : > { %v640_v55 = vpack.c.bf16 %v629_v43, %v628_v45 }
 0x16c   : > { %1194 = vmatmul.msk.bf16.gmra.mxu1 %vm680_vm1, %v640_v55 }
 0x175   : > { %v1321_v48 = vpop.permute.xlu1 %1320 }
 0x176   : > { %v1323_v53 = vunpack.i.h.bf16 %v1321_v48  ;;  %v1322_v57 = vunpack.i.l.bf16 %v1321_v48 }
 0x178   : > { %v631_v46 = vmax.f32 %v519_v7, %v1323_v53  ;;  %v630_v52 = vmax.f32 %v518_v4, %v1322_v57 }
 0x17a   : > { %v641_v58 = vpack.c.bf16 %v631_v46, %v630_v52 }
 0x17c   : > { %1195 = vmatmul.msk.bf16.gmra.mxu1 %vm680_vm1, %v641_v58 }
 0x1a9   : > { %v714_v60 = vpop.f32.mrf.mxu1 }
 0x1aa   : > { %v1736_v20 = vadd.f32 %v1368_v1, %v714_v60 }
 0x1ac   : > { %v754_v28 = vmax.f32 %v1736_v20, 0.0  ;;  %v897_v20 = vld [vmem:[%s1861_s6 + $0x10] sm:$0xff] }
 0x1b1   : > { %v716_v61 = vpop.f32.mrf.mxu1 }
 0x1b2   : > { %v1730_v13 = vadd.f32 %v1368_v1, %v716_v61 }
 0x1b4   : > { %v755_v25 = vmax.f32 %v1730_v13, 0.0  ;;  %v1231_v13 = vld [vmem:[%s1860_s5] sm:$0xff] }
 0x1b6   : > { %v1359_v41 = vpack.i.bf16 %v755_v25, %v754_v28 }
 0x1b9   : > { %v719_v62 = vpop.f32.mrf.mxu1 }
 0x1ba   : > { %v1752_v44 = vadd.f32 %v1368_v1, %v719_v62 }
 0x1bc   : > { %v756_v32 = vmax.f32 %v1752_v44, 0.0 }
 0x1c1   : > { %v721_v63 = vpop.f32.mrf.mxu1 }
 0x1c2   : > { %v1746_v22 = vadd.f32 %v1368_v1, %v721_v63 }
 0x1c4   : > { %v757_v36 = vmax.f32 %v1746_v22, 0.0  ;;  %v895_v22 = vld [vmem:[%s1861_s6] sm:$0xff] }
 0x1c6   : > { %v1354_v51 = vpack.i.bf16 %v757_v36, %v756_v32 }
 0x1c9   : > { %v724_v0 = vpop.f32.mrf.mxu1 }
 0x1ca   : > { %v725_v34 = vadd.f32 %v1368_v1, %v724_v0 }
 0x1cc   : > { %v758_v50 = vmax.f32 %v725_v34, 0.0 }
 0x1d1   : > { %v726_v56 = vpop.f32.mrf.mxu1 }
 0x1d2   : > { %v727_v54 = vadd.f32 %v1368_v1, %v726_v56 }
 0x1d4   : > { %v759_v40 = vmax.f32 %v727_v54, 0.0 }
 0x1d6   : > { %v1349_v45 = vpack.i.bf16 %v759_v40, %v758_v50 }
 0x1d7   : > { %v744_v59 = vpop.f32.mrf.mxu3 }
 0x1d8   : > { %v1718_v5 = vadd.f32 %v1368_v1, %v744_v59 }
 0x1d9   : > { %v729_v2 = vpop.f32.mrf.mxu1 }
 0x1da   : > { %v766_v3 = vmax.f32 %v1718_v5, 0.0  ;;  %v1723_v8 = vadd.f32 %v1368_v1, %v729_v2 }
 0x1dc   : > { %v760_v12 = vmax.f32 %v1723_v8, 0.0 }
 0x1df   : > { %v746_v4 = vpop.f32.mrf.mxu3 }
 0x1e0   : > { %v1721_v6 = vadd.f32 %v1368_v1, %v746_v4 }
 0x1e1   : > { %v731_v7 = vpop.f32.mrf.mxu1 }
 0x1e2   : > { %v767_v9 = vmax.f32 %v1721_v6, 0.0  ;;  %v1726_v10 = vadd.f32 %v1368_v1, %v731_v7 }
 0x1e4   : > { %v761_v11 = vmax.f32 %v1726_v10, 0.0  ;;  %v1329_v17 = vpack.i.bf16 %v767_v9, %v766_v3 }
 0x1e6   : > { %1330 = vrot.lane.b32.xlu0 %v1329_v17, %s1434_s25  ;;  %v1344_v15 = vpack.i.bf16 %v761_v11, %v760_v12 }
 0x1e7   : > { %v749_v14 = vpop.f32.mrf.mxu3 }
 0x1e8   : > { %v750_v23 = vadd.f32 %v1368_v1, %v749_v14 }
 0x1e9   : > { %v734_v21 = vpop.f32.mrf.mxu1 }
 0x1ea   : > { %v768_v29 = vmax.f32 %v750_v23, 0.0  ;;  %v735_v30 = vadd.f32 %v1368_v1, %v734_v21 }
 0x1ec   : > { %v762_v37 = vmax.f32 %v735_v30, 0.0 }
 0x1ee   : > { %1345 = vrot.lane.b32.xlu0 %v1344_v15, %s1434_s25 }
 0x1ef   : > { %v751_v18 = vpop.f32.mrf.mxu3 }
 0x1f0   : > { %v752_v19 = vadd.f32 %v1368_v1, %v751_v18 }
 0x1f1   : > { %v736_v16 = vpop.f32.mrf.mxu1 }
 0x1f2   : > { %v769_v35 = vmax.f32 %v752_v19, 0.0  ;;  %v737_v26 = vadd.f32 %v1368_v1, %v736_v16 }
 0x1f4   : > { %v763_v27 = vmax.f32 %v737_v26, 0.0  ;;  %v1324_v24 = vpack.i.bf16 %v769_v35, %v768_v29 }
 0x1f6   : > { %1325 = vrot.lane.b32.xlu2 %v1324_v24, %s1434_s25  ;;  %1360 = vrot.lane.b32.xlu0 %v1359_v41, %s1434_s25  ;;  %v1339_v47 = vpack.i.bf16 %v763_v27, %v762_v37 }
 0x1f9   : > { %v739_v42 = vpop.f32.mrf.mxu1 }
 0x1fa   : > { %v740_v31 = vadd.f32 %v1368_v1, %v739_v42 }
 0x1fc   : > { %v764_v38 = vmax.f32 %v740_v31, 0.0 }
 0x1fe   : > { %1340 = vrot.lane.b32.xlu2 %v1339_v47, %s1434_s25 }
 0x201   : > { %v741_v49 = vpop.f32.mrf.mxu1 }
 0x202   : > { %v742_v33 = vadd.f32 %v1368_v1, %v741_v49 }
 0x204   : > { %v765_v39 = vmax.f32 %v742_v33, 0.0 }
 0x206   : > { %1355 = vrot.lane.b32.xlu2 %v1354_v51, %s1434_s25  ;;  %v1334_v43 = vpack.i.bf16 %v765_v39, %v764_v38 }
 0x208   : > { %1335 = vrot.lane.b32.xlu1 %v1334_v43, %s1434_s25 }
 0x210   : > { %1350 = vrot.lane.b32.xlu1 %v1349_v45, %s1434_s25 }
 0x250   : > { %v1326_v55 = vpop.permute.xlu2 %1325 }
 0x251   : > { %v1328_v48 = vunpack.i.h.bf16 %v1326_v55  ;;  %v1327_v53 = vunpack.i.l.bf16 %v1326_v55  ;;  %v1232_v55 = vld [vmem:[%s1860_s5 + $0x8] sm:$0xff] }
 0x253   : > { %v880_v57 = vmax.f32 %v768_v29, %v1327_v53  ;;  %v881_v46 = vmax.f32 %v769_v35, %v1328_v48  ;;  %v894_v48 = vld [vmem:[%s1860_s5 + $0x10] sm:$0xf] }
 0x254   : > { %v934_v53 = vunpack.c.l.b16 %v894_v48 }
 0x255   : > { %v889_v52 = vpack.c.bf16 %v881_v46, %v880_v57 }
 0x256   : > { %v937_v57 = vpack.c.b16 %v934_v53, %v934_v53 }
 0x257   : > { %v970_v58 = vsel %vm938_vm2, %v889_v52, 0 }
 0x258   : > { %972 = vmatpush.bf16.xpose.msra.mxu2 %v970_v58  ;;  %v1331_v60 = vpop.permute.xlu0 %1330  ;;  %v1341_v1 = vpop.permute.xlu2 %1340 }
 0x259   : > { %v1333_v61 = vunpack.i.h.bf16 %v1331_v60  ;;  %v1332_v62 = vunpack.i.l.bf16 %v1331_v60  ;;  %v1343_v14 = vunpack.i.h.bf16 %v1341_v1  ;;  %v1342_v17 = vunpack.i.l.bf16 %v1341_v1 }
 0x25b   : > { %v879_v63 = vmax.f32 %v767_v9, %v1333_v61  ;;  %v878_v0 = vmax.f32 %v766_v3, %v1332_v62  ;;  %v875_v18 = vmax.f32 %v763_v27, %v1343_v14  ;;  %v874_v19 = vmax.f32 %v762_v37, %v1342_v17 }
 0x25d   : > { %v888_v56 = vpack.c.bf16 %v879_v63, %v878_v0  ;;  %v886_v15 = vpack.c.bf16 %v875_v18, %v874_v19 }
 0x25f   : > { %v967_v59 = vsel %vm938_vm2, %v888_v56, 0  ;;  %v961_v35 = vsel %vm938_vm2, %v886_v15, 0  ;;  %v1000_v15 = vld [vmem:[%s1862_s7] sm:$0xf] }
 0x260   : > { %973 = vmatpush.bf16.xpose.msra.mxu2 %v967_v59  ;;  %v1346_v9 = vpop.permute.xlu0 %1345  ;;  %v1356_v10 = vpop.permute.xlu2 %1355 }
 0x261   : > { %v1348_v5 = vunpack.i.h.bf16 %v1346_v9  ;;  %v1347_v3 = vunpack.i.l.bf16 %v1346_v9  ;;  %v1358_v8 = vunpack.i.h.bf16 %v1356_v10 }
 0x263   : > { %v873_v16 = vmax.f32 %v761_v11, %v1348_v5  ;;  %v872_v30 = vmax.f32 %v760_v12, %v1347_v3  ;;  %v1435_v11 = vmov 0   ;;  %v1357_v12 = vunpack.i.l.bf16 %v1356_v10 }
 0x264   : > { %1364 = vset.pattern.permute.xlu1 %v1435_v11  ;;  %1366 = vset.pattern.permute.xlu0 %v1435_v11  ;;  %v869_v49 = vmax.f32 %v757_v36, %v1358_v8 }
 0x265   : > { %v885_v37 = vpack.c.bf16 %v873_v16, %v872_v30  ;;  %1365 = vset.pattern.permute.xlu2 %v1435_v11  ;;  %v868_v54 = vmax.f32 %v756_v32, %v1357_v12  ;;  %v896_v32 = vld [vmem:[%s1861_s6 + $0x8] sm:$0xff] }
 0x266   : > { %912 = vperm.xlu2 %1365, %v897_v20  }
 0x267   : > { %v958_v31 = vsel %vm938_vm2, %v885_v37, 0 }
 0x268   : > { %v1361_v34 = vpop.permute.xlu0 %1360 }
 0x26e   : > { %907 = vperm.xlu2 %1365, %v896_v32  }
 0x27a   : > { %v1336_v2 = vpop.permute.xlu1 %1335 }
 0x27b   : > { %v1338_v4 = vunpack.i.h.bf16 %v1336_v2  ;;  %v1337_v7 = vunpack.i.l.bf16 %v1336_v2 }
 0x27d   : > { %v877_v21 = vmax.f32 %v765_v39, %v1338_v4  ;;  %v876_v23 = vmax.f32 %v764_v38, %v1337_v7  ;;  %v899_v38 = vld [vmem:[%s1861_s6 + $0x20] sm:$0xff]  ;;  %v1363_v39 = vunpack.i.h.bf16 %v1361_v34 }
 0x27e   : > { %922 = vperm.xlu1 %1364, %v899_v38  }
 0x27f   : > { %v887_v29 = vpack.c.bf16 %v877_v21, %v876_v23  ;;  %v867_v51 = vmax.f32 %v755_v25, %v1363_v39  ;;  %v898_v25 = vld [vmem:[%s1861_s6 + $0x18] sm:$0xff] }
 0x280   : > { %917 = vperm.xlu0 %1366, %v898_v25  }
 0x281   : > { %v964_v6 = vsel %vm938_vm2, %v887_v29, 0 }
 0x282   : > { %974 = vmatpush.bf16.xpose.msra.mxu2 %v964_v6  ;;  %v1351_v26 = vpop.permute.xlu1 %1350 }
 0x283   : > { %v1353_v24 = vunpack.i.h.bf16 %v1351_v26  ;;  %v1352_v27 = vunpack.i.l.bf16 %v1351_v26 }
 0x285   : > { %v871_v41 = vmax.f32 %v759_v40, %v1353_v24  ;;  %v870_v42 = vmax.f32 %v758_v50, %v1352_v27  ;;  %v1362_v40 = vunpack.i.l.bf16 %v1361_v34  ;;  %v883_v50 = vpack.c.bf16 %v869_v49, %v868_v54 }
 0x286   : > { %902 = vperm.xlu1 %1364, %v895_v22  }
 0x287   : > { %v884_v47 = vpack.c.bf16 %v871_v41, %v870_v42  ;;  %v866_v43 = vmax.f32 %v754_v28, %v1362_v40  ;;  %v952_v45 = vsel %vm938_vm2, %v883_v50, 0  ;;  %v1004_v28 = vld [vmem:[%s1863_s8] sm:$0xff] }
 0x289   : > { %v955_v33 = vsel %vm938_vm2, %v884_v47, 0  ;;  %v882_v44 = vpack.c.bf16 %v867_v51, %v866_v43 }
 0x28a   : > { %975 = vmatpush.bf16.xpose.msra.mxu2 %v961_v35 }
 0x28b   : > { %v949_v36 = vsel %vm938_vm2, %v882_v44, 0 }
 0x28e   : > { %1007 = vperm.xlu1 %1364, %v1004_v28  }
 0x292   : > { %976 = vmatpush.bf16.xpose.msra.mxu2 %v958_v31 }
 0x29a   : > { %977 = vmatpush.bf16.xpose.msra.mxu2 %v955_v33 }
 0x2a2   : > { %978 = vmatpush.bf16.xpose.msra.mxu2 %v952_v45 }
 0x2aa   : > { %979 = vmatpush.bf16.xpose.msra.mxu2 %v949_v36 }
 0x2b1   : > { %1206 = vmatmul.msk.bf16.vlgmr.msra.gmra.mxu2 %vm938_vm2, %v1231_v13 }
 0x2c0   : > { %v913_v61 = vpop.permute.xlu2 %912 }
 0x2c1   : > { %1207 = vmatmul.msk.bf16.gmra.mxu2 %vm938_vm2, %v1232_v55 }
 0x2c8   : > { %v908_v1 = vpop.permute.xlu2 %907 }
 0x2d1   : > { %1208 = vmatmul.msk.bf16.gmra.mxu2 %vm938_vm2, %v937_v57 }
 0x2f0   : > { %v923_v62 = vpop.permute.xlu1 %922 }
 0x2f2   : > { %v918_v63 = vpop.permute.xlu0 %917 }
 0x2f8   : > { %v903_v7 = vpop.permute.xlu1 %902 }
 0x300   : > { %v1008_v16 = vpop.permute.xlu1 %1007 }
 0x334   : > { %v981_v46 = vpop.f32.mrf.mxu2 }
 0x335   : > { %v982_v29 = vadd.f32 %v981_v46, %v903_v7 }
 0x337   : > { %v995_v5 = vmax.f32 %v982_v29, 0.0 }
 0x33c   : > { %v983_v52 = vpop.f32.mrf.mxu2 }
 0x33d   : > { %v984_v17 = vadd.f32 %v983_v52, %v908_v1 }
 0x33f   : > { %v996_v6 = vmax.f32 %v984_v17, 0.0 }
 0x341   : > { %v1001_v3 = vpack.c.bf16 %v996_v6, %v995_v5 }
 0x344   : > { %v986_v58 = vpop.f32.mrf.mxu2 }
 0x345   : > { %v987_v4 = vadd.f32 %v986_v58, %v913_v61 }
 0x347   : > { %v997_v18 = vmax.f32 %v987_v4, 0.0 }
 0x34c   : > { %v988_v60 = vpop.f32.mrf.mxu2 }
 0x34d   : > { %v989_v59 = vadd.f32 %v988_v60, %v918_v63 }
 0x34f   : > { %v998_v21 = vmax.f32 %v989_v59, 0.0 }
 0x351   : > { %v1002_v9 = vpack.c.bf16 %v998_v21, %v997_v18 }
 0x354   : > { %v991_v0 = vpop.f32.mrf.mxu2 }
 0x355   : > { %v992_v56 = vadd.f32 %v991_v0, %v923_v62 }
 0x357   : > { %v999_v2 = vmax.f32 %v992_v56, 0.0 }
 0x359   : > { %v1003_v14 = vpack.c.bf16 %v999_v2, %v999_v2 }
 0x35b   : > { %v1016_v23 = vsel %vm1014_vm3, %v1003_v14, 0 }
 0x35c   : > { %v993_v19 = vpop.f32.mrf.mxu2  ;;  %1023 = vmatpush.bf16.msra.mxu3 %v1016_v23 }
 0x360   : > { %1024 = vmatpush.bf16.msra.mxu3 %v1002_v9 }
 0x364   : > { %1025 = vmatpush.bf16.msra.mxu3 %v1001_v3 }
 0x367   : > { %1209 = vmatmul.msk.bf16.vlgmr.msra.gmra.mxu3 %vm1010_vm4, %v1000_v15 }
 0x3ea   : > { %v1027_v30 = vpop.f32.mrf.mxu3 }
 0x3eb   : > { %v1028_v35 = vadd.f32 %v1027_v30, %v1008_v16 }
 0x3ed   : > { %1031 = vst [vmem:[%s326_s28] sm:$0xff] %v1028_v35 }
 0x3ee   : > { %1396 = shalt.err (!%p1393_p3)
}
 0x3ef   : > { %1242 = dma.vmem_to_hbm [thread:$0]  (%p1524_p5), %s1046_s29, 128, %s1048_s14, %s1033_s16  }
 0x3f2   : > { %v1029_v26 = vpop.f32.mrf.mxu3 }
 0x3f3 PF: > { %p1248_p4 = scmp.ge.s32.totalorder %s1431_s12, 2  ;;  %s1059_s22 = sand.u32 1, %s1419_s30  }
 0x3f4   : > { %s1060_s27 = scalar_lea.sflag [#allocation3], %s1059_s22 }
 0x3f5   : > { %p1245_p7 = pnand %p1248_p4, %p1528_p6 }
 0x3f7   : > { %p1246_p8 = pneg %p1245_p7 }
 0x3f9   : > { %1414 = dma.done.wait (%p1246_p8), %s1060_s27, 128  }
 0x3fa   : > { %1416 = vsyncadd (%p1246_p8), %s1060_s27, 4294967168  ;;  %p19_p9 = scmp.ge.s32.totalorder %s1511_s15, 4   ;;  %s1867_s30 = smov %s1423_s10 }
 0x3fb   : > { %s1868_s10 = smov %s1427_s11  ;;  %s1869_s11 = smov %s1522_s18 }
 0x3fc   : > { %s1870_s12 = smov %s1511_s15  ;;  %21 = sbr.rel (!%p19_p9) target bundleno = 3 (0x3), region = 91 }
 0x401   :  { %1066 = vsyncpa [#allocation3], 1 }
 0x402   :  { %1068 = vsyncpa [#allocation3 + $0x1], 1 }

</bundles_post_ra>
